<compile_context>
chip_gen: v7x
topology: tpu7x:2x2x1
jax: 0.10.0
libtpu: 0.0.40
codegen_flags: <defaults>
</compile_context>

<pallas_src>
import functools

import jax
import jax.numpy as jnp
from jax.experimental import pallas as pl
from jax.experimental.pallas import tpu as pltpu


def _round_up(x, m):
    return (x + m - 1) // m * m


def _cdiv(a, b):
    return -(-a // b)


def _device_kind():
    try:
        return jax.devices()[0].device_kind.lower()
    except Exception:
        return ""


def _hidden_pad_multiple():
    # v6e/v7x MXUs are 2x256x256 -> pad hidden (K and N of p@W2) to 256;
    # 128 remains optimal for v5e's 4x128x128 MXU (and the non-TPU fallback).
    kind = _device_kind()
    return 256 if ("v6" in kind or "v7" in kind) else 128


def _vmem_cap_bytes():
    # v7x has only 64 MiB physical VMEM per TensorCore -> clamp lower there;
    # v5e/v6e have 128 MiB physical, so allow up to ~100 MiB scoped.
    return (48 << 20) if "v7" in _device_kind() else (100 << 20)


_TN_CAP = 1024  # max W2 output-column panel kept resident (bf16) when H is large


def _spec(shape, index_map, *, buffers=None):
    """BlockSpec helper: single-buffer grid-invariant operands on TPU.

    Double-buffering a constant-index operand doubles its VMEM residency
    (W2 dominates) for zero benefit.  Only applied on the TPU backend so the
    interpret/CPU fallback never sees the hint; degrades gracefully if the
    installed jax lacks pipeline_mode.
    """
    if (buffers is not None and hasattr(pl, "Buffered")
            and jax.default_backend() == "tpu"):
        try:
            return pl.BlockSpec(shape, index_map,
                                pipeline_mode=pl.Buffered(buffers))
        except TypeError:  # older jax without pipeline_mode kwarg
            pass
    return pl.BlockSpec(shape, index_map)


# ----------------------------------------------------------------------------
# Kernel
# ----------------------------------------------------------------------------
def _embedder_kernel(seed_ref, x_ref, w1_ref, b1_ref, w2_ref, mask_ref,
                     demb_ref, *rest, noise_mode):
    if noise_mode == "hbm":
        noise_ref, out_ref, p_ref = rest
    else:
        out_ref, p_ref = rest

    j = pl.program_id(1)

    # Linear(bias) + Softmax(dim=1) once per batch tile; probabilities cached
    # in a bf16 VMEM scratch and reused for every W2 column panel.
    @pl.when(j == 0)
    def _():
        x = x_ref[...]                                                 # (tb, D) bf16
        h = jnp.dot(x, w1_ref[...],
                    preferred_element_type=jnp.float32) + b1_ref[...]  # (tb, Hp) f32
        h = h - jnp.max(h, axis=-1, keepdims=True)
        e = jnp.exp(h)            # padded hidden cols carry bias=-1e9 -> exp()==0
        # approx reciprocal: probs sum to ~1 (well inside 3e-3 tolerance);
        # switch to approx=False if a downstream consumer is sensitive.
        p = e * pl.reciprocal(jnp.sum(e, axis=-1, keepdims=True), approx=True)
        p_ref[...] = p.astype(p_ref.dtype)

    # Linear(no bias) on the current output-column panel (MXU, f32 accumulate).
    y = jnp.dot(p_ref[...], w2_ref[...],
                preferred_element_type=jnp.float32)                    # (tb, tn) f32

    # classifier-free-guidance drop: dropped rows take the drop-embedding row.
    mask = mask_ref[...]                                               # (tb, 1) f32
    out = jnp.where(mask > 0.5, demb_ref[...], y)

    if noise_mode == "prng":
        # torch.randn_like equivalent via the TPU hardware PRNG + Box-Muller.
        # Multi-value seed (seed, i, j) decorrelates the per-tile streams.
        pltpu.prng_seed(seed_ref[0], pl.program_id(0), j)

        tb, tn = out_ref.shape
        half = tb // 2

        def unit_uniform(shape):
            bits = pltpu.prng_random_bits(shape)
            if bits.dtype != jnp.int32:
                bits = pltpu.bitcast(bits, jnp.int32)
            frac = bits & 0x7FFFFF                        # low 23 bits, >= 0
            return frac.astype(jnp.float32) * (1.0 / (1 << 23))        # [0, 1)

        # Half-height Box-Muller using BOTH outputs (r*cos, r*sin): halves the
        # prng bit volume and the log/sqrt/cos/sin transcendental count.
        u1 = unit_uniform((half, tn))
        u2 = unit_uniform((half, tn))
        r = jnp.sqrt(-2.0 * jnp.log(1.0 - u1))            # 1-u1 in (0, 1]
        theta = 6.283185307179586 * u2
        noise = jnp.concatenate([r * jnp.cos(theta), r * jnp.sin(theta)], axis=0)
        out = out + noise
    elif noise_mode == "hbm":
        # Non-TPU / interpret fallback: noise streamed from HBM.
        out = out + noise_ref[...]

    out_ref[...] = out.astype(out_ref.dtype)


# ----------------------------------------------------------------------------
# pallas_call wrapper
# ----------------------------------------------------------------------------
def _pallas_embedder(seed, labels, w1, b1, w2, mask, demb, noise, *,
                     tb, tn, noise_mode, out_dtype):
    Bp, D = labels.shape
    Hp = w1.shape[1]
    nj = Hp // tn
    grid = (Bp // tb, nj)

    # W1/b1 are grid-invariant -> single-buffer; W2/drop_emb are also
    # grid-invariant when they are not column-tiled (nj == 1).
    w2_bufs = 1 if nj == 1 else None

    in_specs = [
        pl.BlockSpec((tb, D), lambda i, j, s: (i, 0)),                 # labels bf16
        _spec((D, Hp), lambda i, j, s: (0, 0), buffers=1),             # W1 bf16
        _spec((1, Hp), lambda i, j, s: (0, 0), buffers=1),             # b1 f32
        _spec((Hp, tn), lambda i, j, s: (0, j), buffers=w2_bufs),      # W2 bf16
        pl.BlockSpec((tb, 1), lambda i, j, s: (i, 0)),                 # cfg drop mask
        _spec((1, tn), lambda i, j, s: (0, j), buffers=w2_bufs),       # drop embedding
    ]
    args = [seed, labels, w1, b1, w2, mask, demb]
    if noise_mode == "hbm":
        in_specs.append(pl.BlockSpec((tb, tn), lambda i, j, s: (i, j)))
        args.append(noise)

    # VMEM budget from the actual block footprint (single-buffered resident
    # weights + double-buffered streamed blocks + p scratch) with headroom,
    # clamped per generation instead of a hardcoded 32 MiB.
    out_bytes = jnp.dtype(out_dtype).itemsize
    w2b = 1 if nj == 1 else 2
    resident = D * Hp * 2 + Hp * 4 + tb * Hp * 2            # W1 + b1 + p scratch
    resident += Hp * tn * 2 * w2b + tn * 4 * w2b            # W2 panel + drop_emb
    streamed = 2 * (tb * D * 2 + tb * 4 + tb * tn * out_bytes)
    if noise_mode == "hbm":
        streamed += 2 * tb * tn * 4
    vmem_limit = int(min(max(resident + streamed + (8 << 20), 32 << 20),
                         _vmem_cap_bytes()))

    kernel = functools.partial(_embedder_kernel, noise_mode=noise_mode)
    return pl.pallas_call(
        kernel,
        out_shape=jax.ShapeDtypeStruct((Bp, Hp), out_dtype),
        grid_spec=pltpu.PrefetchScalarGridSpec(
            num_scalar_prefetch=1,                            # seed -> SMEM
            grid=grid,
            in_specs=in_specs,
            out_specs=pl.BlockSpec((tb, tn), lambda i, j, s: (i, j)),
            scratch_shapes=[pltpu.VMEM((tb, Hp), jnp.bfloat16)],  # softmax probs
        ),
        compiler_params=pltpu.CompilerParams(
            # batch tiles are independent -> megacore-shardable; the W2 column
            # panels reuse the p scratch -> must stay in-order on one core.
            dimension_semantics=("parallel", "arbitrary"),
            vmem_limit_bytes=vmem_limit,
        ),
    )(*args)


# ----------------------------------------------------------------------------
# Parameter handling (pad/cast ONCE, not per forward call)
# ----------------------------------------------------------------------------
def init_params(key, input_size, hidden_size, dropout_prob):
    """Deterministic synthetic parameter init (shapes match the torch module)."""
    k1, k2, k3, k4 = jax.random.split(key, 4)
    bound1 = 1.0 / jnp.sqrt(input_size)
    bound2 = 1.0 / jnp.sqrt(hidden_size)
    params = {
        # stored already transposed to [in, out]
        "w1": jax.random.uniform(k1, (input_size, hidden_size),
                                 jnp.float32, -bound1, bound1),
        "b1": jax.random.uniform(k2, (1, hidden_size),
                                 jnp.float32, -bound1, bound1),
        "w2": jax.random.uniform(k3, (hidden_size, hidden_size),
                                 jnp.float32, -bound2, bound2),
    }
    if dropout_prob > 0:
        params["drop_emb"] = jax.random.normal(k4, (1, hidden_size), jnp.float32)
    else:
        params["drop_emb"] = jnp.zeros((1, hidden_size), jnp.float32)
    return params


def prepare_params(params):
    """One-time pad + cast of the weights (hoisted out of the forward pass).

    Hidden is padded to a lane-dense, MXU-friendly multiple (256 on v6e/v7x,
    128 otherwise); matmul weights are cast to bf16 (fp32 MXU accumulation);
    padded softmax columns are disabled with a -1e9 bias pad; W2 is column-
    tiled for very large H so its resident panel fits the v7x VMEM budget.
    """
    D, H = params["w1"].shape
    gran = _hidden_pad_multiple()
    Hp = _round_up(H, gran)
    tn = Hp if Hp <= 2 * _TN_CAP else _TN_CAP
    Hp = _round_up(Hp, tn)
    drop_emb = params.get("drop_emb")
    if drop_emb is None:
        drop_emb = jnp.zeros((1, H), jnp.float32)
    return {
        "w1": jnp.pad(params["w1"].astype(jnp.bfloat16), ((0, 0), (0, Hp - H))),
        "b1": jnp.pad(params["b1"].astype(jnp.float32), ((0, 0), (0, Hp - H)),
                      constant_values=-1e9),
        "w2": jnp.pad(params["w2"].astype(jnp.bfloat16),
                      ((0, Hp - H), (0, Hp - H))),
        "drop_emb": jnp.pad(drop_emb.astype(jnp.float32), ((0, 0), (0, Hp - H))),
        "D": D, "H": H, "Hp": Hp, "tn": tn,
    }


# ----------------------------------------------------------------------------
# Public forward (mirrors ClusterContinuousEmbedder.forward)
# ----------------------------------------------------------------------------
def cluster_continuous_embedder(labels, params, *, train, dropout_prob,
                                force_drop_ids=None, key=None, tb=256,
                                out_dtype=jnp.float32, noise_impl=None):
    """JAX wrapper reproducing ClusterContinuousEmbedder.forward semantics."""
    if "Hp" not in params:  # production code should call prepare_params once
        params = prepare_params(params)
    B, D = labels.shape
    assert D == params["D"]
    H, Hp, tn = params["H"], params["Hp"], params["tn"]
    use_dropout = dropout_prob > 0

    # --- cfg drop-id logic (tiny glue, plain JAX) ----------------------------
    # TODO(synk): torch.rand / torch.randn RNG streams are not reproduced
    # bit-exactly; drop decisions and noise use JAX / TPU-PRNG randomness.
    drop_ids = None
    if use_dropout and force_drop_ids is not None:
        drop_ids = (force_drop_ids == 1)
    if train and use_dropout:
        assert key is not None, "train=True requires a PRNG key"
        key, sub = jax.random.split(key)
        rand_drop = jax.random.uniform(sub, (B,)) < dropout_prob
        drop_ids = rand_drop if drop_ids is None else jnp.logical_or(drop_ids,
                                                                     rand_drop)
    if drop_ids is None:
        drop_mask = jnp.zeros((B, 1), jnp.float32)
    else:
        drop_mask = drop_ids.astype(jnp.float32).reshape(B, 1)

    # --- batch tiling: multiple of 16 (sublane-aligned Box-Muller halves) and
    # small enough that >=2 batch tiles exist when B allows, so a 2-TensorCore
    # chip (v7x) can shard the "parallel" batch axis. ------------------------
    tb = min(max(16, _round_up(tb, 16)), max(16, _round_up(_cdiv(B, 2), 16)))
    Bp = _round_up(B, tb)

    # --- noise implementation: in-kernel TPU PRNG on TPU, streamed
    # jax.random.normal otherwise (CPU / interpret mode has no prng lowering).
    if noise_impl is None:
        noise_impl = "prng" if jax.default_backend() == "tpu" else "hbm"
    noise_mode = noise_impl if train else "none"

    noise = None
    if train:
        assert key is not None, "train=True requires a PRNG key"
        key, sub = jax.random.split(key)
        if noise_mode == "prng":
            seed = jax.random.randint(sub, (1,), 0, jnp.iinfo(jnp.int32).max,
                                      dtype=jnp.int32)
        else:
            seed = jnp.zeros((1,), jnp.int32)
            noise = jax.random.normal(sub, (Bp, Hp), jnp.float32)
    else:
        seed = jnp.zeros((1,), jnp.int32)

    # Per-call data (labels / drop mask) padded to the tile grid.
    labels_p = jnp.pad(labels.astype(jnp.bfloat16), ((0, Bp - B), (0, 0)))
    mask_p = jnp.pad(drop_mask, ((0, Bp - B), (0, 0)))

    out = _pallas_embedder(seed, labels_p, params["w1"], params["b1"],
                           params["w2"], mask_p, params["drop_emb"], noise,
                           tb=tb, tn=tn, noise_mode=noise_mode,
                           out_dtype=out_dtype)
    return out[:B, :H]


def _reference(labels, params, drop_mask):
    """Pure-JAX reference mirroring the kernel's bf16 matmul precision."""
    x = labels.astype(jnp.bfloat16)
    w1 = params["w1"].astype(jnp.bfloat16)
    w2 = params["w2"].astype(jnp.bfloat16)
    h = jnp.dot(x, w1, preferred_element_type=jnp.float32) + params["b1"]
    p = jax.nn.softmax(h, axis=1)
    y = jnp.dot(p.astype(jnp.bfloat16), w2, preferred_element_type=jnp.float32)
    return jnp.where(drop_mask > 0.5, params["drop_emb"], y)


if __name__ == "__main__":
    B, INPUT_SIZE, HIDDEN = 8, 16, 32
    DROPOUT_PROB = 0.1

    root = jax.random.PRNGKey(0)
    kp, kx, kx2, kfwd = jax.random.split(root, 4)

    params = init_params(kp, INPUT_SIZE, HIDDEN, DROPOUT_PROB)
    prepped = prepare_params(params)          # pad/cast ONCE, reused every call
    labels = jax.random.normal(kx, (B, INPUT_SIZE), jnp.float32)
    force_drop_ids = jnp.array([0, 1, 0, 0, 1, 0, 0, 0], jnp.int32)

    # --- eval path (deterministic, no noise) ---------------------------------
    out_eval = cluster_continuous_embedder(
        labels, prepped, train=False, dropout_prob=DROPOUT_PROB,
        force_drop_ids=force_drop_ids)
    jax.block_until_ready(out_eval)
    assert out_eval.shape == (B, HIDDEN)

    drop_mask = (force_drop_ids == 1).astype(jnp.float32).reshape(B, 1)
    ref = _reference(labels, params, drop_mask)
    assert jnp.allclose(out_eval, ref, atol=3e-3, rtol=3e-3), \
        float(jnp.max(jnp.abs(out_eval - ref)))

    # --- eval path with a batch NOT divisible by the tile (padding path) -----
    B2 = 13
    labels2 = jax.random.normal(kx2, (B2, INPUT_SIZE), jnp.float32)
    out_eval2 = cluster_continuous_embedder(
        labels2, prepped, train=False, dropout_prob=DROPOUT_PROB)
    jax.block_until_ready(out_eval2)
    assert out_eval2.shape == (B2, HIDDEN)
    ref2 = _reference(labels2, params, jnp.zeros((B2, 1), jnp.float32))
    assert jnp.allclose(out_eval2, ref2, atol=3e-3, rtol=3e-3), \
        float(jnp.max(jnp.abs(out_eval2 - ref2)))

    # --- train path (random cfg-drop + Gaussian noise) -----------------------
    out_train = cluster_continuous_embedder(
        labels, prepped, train=True, dropout_prob=DROPOUT_PROB,
        force_drop_ids=force_drop_ids, key=kfwd)
    jax.block_until_ready(out_train)
    assert out_train.shape == (B, HIDDEN)
    assert bool(jnp.isfinite(out_train).all())

    print("KERNEL_OK")
</pallas_src>

<mosaic_0001>
module attributes {stable_mosaic.version = 11 : i64} {
  func.func @_embedder_kernel(%arg0: i32, %arg1: i32, %arg2: memref<1xi32, #tpu.memory_space<smem>>, %arg3: memref<16x16xbf16, #tpu.memory_space<vmem>>, %arg4: memref<16x128xbf16, #tpu.memory_space<vmem>>, %arg5: memref<1x128xf32, #tpu.memory_space<vmem>>, %arg6: memref<128x128xbf16, #tpu.memory_space<vmem>>, %arg7: memref<16x1xf32, #tpu.memory_space<vmem>>, %arg8: memref<1x128xf32, #tpu.memory_space<vmem>>, %arg9: memref<16x128xf32, #tpu.memory_space<vmem>>, %arg10: memref<16x128xbf16, #tpu.memory_space<vmem>>) attributes {dimension_semantics = [#tpu.dimension_semantics<parallel>, #tpu.dimension_semantics<arbitrary>], iteration_bounds = array<i64: 1, 1>, scalar_prefetch = 1 : i64, scratch_operands = 1 : i64, tpu.core_type = #tpu.core_type<tc>, window_params = [{transform_indices = @transform_0, window_bounds = array<i64: 16, 16>}, {pipeline_mode = #tpu.pipeline_mode<synchronous>, transform_indices = @transform_1, window_bounds = array<i64: 16, 128>}, {pipeline_mode = #tpu.pipeline_mode<synchronous>, transform_indices = @transform_2, window_bounds = array<i64: 1, 128>}, {transform_indices = @transform_3, window_bounds = array<i64: 128, 128>}, {transform_indices = @transform_4, window_bounds = array<i64: 16, 1>}, {transform_indices = @transform_5, window_bounds = array<i64: 1, 128>}, {transform_indices = @transform_6, window_bounds = array<i64: 16, 128>}]} {
    %c0_i32 = arith.constant 0 : i32
    %0 = arith.cmpi eq, %arg1, %c0_i32 : i32
    %1 = arith.extui %0 : i1 to i32
    %c0_i32_0 = arith.constant 0 : i32
    %2 = arith.cmpi ne, %1, %c0_i32_0 : i32
    scf.if %2 {
      %c0_11 = arith.constant 0 : index
      %c0_12 = arith.constant 0 : index
      %16 = vector.load %arg3[%c0_11, %c0_12] : memref<16x16xbf16, #tpu.memory_space<vmem>>, vector<16x16xbf16>
      %c0_13 = arith.constant 0 : index
      %c0_14 = arith.constant 0 : index
      %17 = vector.load %arg4[%c0_13, %c0_14] : memref<16x128xbf16, #tpu.memory_space<vmem>>, vector<16x128xbf16>
      %cst_15 = arith.constant dense<0.000000e+00> : vector<16x128xf32>
      %18 = tpu.matmul %16, %17, %cst_15 {dimension_numbers = #tpu.dot_dimension_numbers<[1], [0], [0], [1], [0, 0, 1, 1], [], []>} : vector<16x16xbf16>, vector<16x128xbf16>, vector<16x128xf32> -> vector<16x128xf32>
      %c0_16 = arith.constant 0 : index
      %c0_17 = arith.constant 0 : index
      %19 = vector.load %arg5[%c0_16, %c0_17] : memref<1x128xf32, #tpu.memory_space<vmem>>, vector<1x128xf32>
      %20 = vector.broadcast %19 : vector<1x128xf32> to vector<16x128xf32>
      %21 = arith.addf %18, %20 : vector<16x128xf32>
      %cst_18 = arith.constant dense<0xFF800000> : vector<16xf32>
      %22 = vector.multi_reduction <maximumf>, %21, %cst_18 [1] : vector<16x128xf32> to vector<16xf32>
      %23 = vector.shape_cast %22 : vector<16xf32> to vector<16x1xf32>
      %24 = vector.broadcast %23 : vector<16x1xf32> to vector<16x128xf32>
      %25 = arith.subf %21, %24 : vector<16x128xf32>
      %26 = math.exp %25 : vector<16x128xf32>
      %cst_19 = arith.constant dense<0.000000e+00> : vector<16xf32>
      %27 = vector.multi_reduction <add>, %26, %cst_19 [1] : vector<16x128xf32> to vector<16xf32>
      %28 = vector.shape_cast %27 : vector<16xf32> to vector<16x1xf32>
      %29 = tpu.reciprocal %28 {approx = true} : vector<16x1xf32> -> vector<16x1xf32>
      %30 = vector.broadcast %29 : vector<16x1xf32> to vector<16x128xf32>
      %31 = arith.mulf %26, %30 : vector<16x128xf32>
      %32 = arith.truncf %31 : vector<16x128xf32> to vector<16x128xbf16>
      %c0_20 = arith.constant 0 : index
      %c0_21 = arith.constant 0 : index
      %33 = vector.load %arg10[%c0_20, %c0_21] : memref<16x128xbf16, #tpu.memory_space<vmem>>, vector<16x128xbf16>
      tpu.vector_store %arg10[%c0_20, %c0_21], %32 {strides = array<i32>} : memref<16x128xbf16, #tpu.memory_space<vmem>>, vector<16x128xbf16>,
    } else {
    }
    %c0 = arith.constant 0 : index
    %c0_1 = arith.constant 0 : index
    %3 = vector.load %arg10[%c0, %c0_1] : memref<16x128xbf16, #tpu.memory_space<vmem>>, vector<16x128xbf16>
    %c0_2 = arith.constant 0 : index
    %c0_3 = arith.constant 0 : index
    %4 = vector.load %arg6[%c0_2, %c0_3] : memref<128x128xbf16, #tpu.memory_space<vmem>>, vector<128x128xbf16>
    %cst = arith.constant dense<0.000000e+00> : vector<16x128xf32>
    %5 = tpu.matmul %3, %4, %cst {dimension_numbers = #tpu.dot_dimension_numbers<[1], [0], [0], [1], [0, 0, 1, 1], [], []>} : vector<16x128xbf16>, vector<128x128xbf16>, vector<16x128xf32> -> vector<16x128xf32>
    %c0_4 = arith.constant 0 : index
    %c0_5 = arith.constant 0 : index
    %6 = vector.load %arg7[%c0_4, %c0_5] : memref<16x1xf32, #tpu.memory_space<vmem>>, vector<16x1xf32>
    %cst_6 = arith.constant 5.000000e-01 : f32
    %7 = vector.broadcast %cst_6 : f32 to vector<16x1xf32>
    %8 = arith.cmpf ogt, %6, %7 : vector<16x1xf32>
    %c0_7 = arith.constant 0 : index
    %c0_8 = arith.constant 0 : index
    %9 = vector.load %arg8[%c0_7, %c0_8] : memref<1x128xf32, #tpu.memory_space<vmem>>, vector<1x128xf32>
    %10 = vector.shape_cast %8 : vector<16x1xi1> to vector<16x1xi1>
    %11 = vector.broadcast %10 : vector<16x1xi1> to vector<16x128xi1>
    %12 = vector.shape_cast %9 : vector<1x128xf32> to vector<1x128xf32>
    %13 = vector.broadcast %12 : vector<1x128xf32> to vector<16x128xf32>
    %14 = arith.select %11, %13, %5 : vector<16x128xi1>, vector<16x128xf32>
    %c0_9 = arith.constant 0 : index
    %c0_10 = arith.constant 0 : index
    %15 = vector.load %arg9[%c0_9, %c0_10] : memref<16x128xf32, #tpu.memory_space<vmem>>, vector<16x128xf32>
    tpu.vector_store %arg9[%c0_9, %c0_10], %14 {strides = array<i32>} : memref<16x128xf32, #tpu.memory_space<vmem>>, vector<16x128xf32>,
    return
  }
  func.func @transform_0(%arg0: i32, %arg1: i32, %arg2: memref<1xi32, #tpu.memory_space<smem>>) -> (i32, i32) {
    %c0_i32 = arith.constant 0 : i32
    %c0_i32_0 = arith.constant 0 : i32
    return %arg0, %c0_i32 : i32, i32
  }
  func.func @transform_1(%arg0: i32, %arg1: i32, %arg2: memref<1xi32, #tpu.memory_space<smem>>) -> (i32, i32) {
    %c0_i32 = arith.constant 0 : i32
    %c0_i32_0 = arith.constant 0 : i32
    %c0_i32_1 = arith.constant 0 : i32
    return %c0_i32, %c0_i32_0 : i32, i32
  }
  func.func @transform_2(%arg0: i32, %arg1: i32, %arg2: memref<1xi32, #tpu.memory_space<smem>>) -> (i32, i32) {
    %c0_i32 = arith.constant 0 : i32
    %c0_i32_0 = arith.constant 0 : i32
    %c0_i32_1 = arith.constant 0 : i32
    return %c0_i32, %c0_i32_0 : i32, i32
  }
  func.func @transform_3(%arg0: i32, %arg1: i32, %arg2: memref<1xi32, #tpu.memory_space<smem>>) -> (i32, i32) {
    %c0_i32 = arith.constant 0 : i32
    %c0_i32_0 = arith.constant 0 : i32
    return %c0_i32, %arg1 : i32, i32
  }
  func.func @transform_4(%arg0: i32, %arg1: i32, %arg2: memref<1xi32, #tpu.memory_space<smem>>) -> (i32, i32) {
    %c0_i32 = arith.constant 0 : i32
    %c0_i32_0 = arith.constant 0 : i32
    return %arg0, %c0_i32 : i32, i32
  }
  func.func @transform_5(%arg0: i32, %arg1: i32, %arg2: memref<1xi32, #tpu.memory_space<smem>>) -> (i32, i32) {
    %c0_i32 = arith.constant 0 : i32
    %c0_i32_0 = arith.constant 0 : i32
    return %c0_i32, %arg1 : i32, i32
  }
  func.func @transform_6(%arg0: i32, %arg1: i32, %arg2: memref<1xi32, #tpu.memory_space<smem>>) -> (i32, i32) {
    %c0_i32 = arith.constant 0 : i32
    return %arg0, %arg1 : i32, i32
  }
}

</mosaic_0001>

<bundles_post_ra>
// kernel: tpu_custom_call.1
= control target key start
LH: loop header
LB: loop body
LE: loop exit
PB: predicated region body
PF: predicated region fallthrough
CT: control target
= control target key end

     0   :  { %13 = vsyncpa [#allocation6], 0  ;;  %s498_s0 = inlined_call_operand.<no memory space> [shape: s32[1], index: 0, kind: input, shape index: {}]   ;;  %s499_s1 = inlined_call_operand.vmem [shape: bf16[16,16], index: 1, kind: input, shape index: {}]   ;;  %s500_s2 = inlined_call_operand.vmem [shape: bf16[16,128], index: 2, kind: input, shape index: {}]   ;;  %s501_s3 = inlined_call_operand.vmem [shape: f32[1,128], index: 3, kind: input, shape index: {}]   ;;  %s502_s4 = inlined_call_operand.hbm [shape: bf16[128,128], index: 4, kind: input, shape index: {}]   ;;  %s503_s5 = inlined_call_operand.vmem [shape: f32[16,1], index: 5, kind: input, shape index: {}]   ;;  %s504_s6 = inlined_call_operand.vmem [shape: f32[1,128], index: 6, kind: input, shape index: {}]   ;;  %s505_s7 = inlined_call_operand.hbm [shape: f32[16,128], index: 7, kind: output, shape index: {}]  }
   0x1   :  { %14 = vsyncpa [#allocation7], 0  ;;  %s407_s23 = smov [#allocation5]   ;;  %s359_s27 = scalar_lea.hbm %s502_s4, 1024 }
   0x2   :  { %s26_s24 = sshll.u32 %s407_s23, 4  ;;  %p360_p0 = scmp.ne.s32.totalorder %s502_s4, %s359_s27  ;;  %s27_s24 = int_to_ptr.vmem [resolvable:$true] %s26_s24 }
   0x3   :  { %p363_p1 = scmp.lt.u32.totalorder %s359_s27, %s502_s4 }
   0x5   :  { %p365_p2 = pnand %p363_p1, %p360_p0 }
   0x7   :  { %368 = shalt.err (!%p365_p2)
}
   0x8   :  { %s369_s9 = scalar_lea.vmem %s27_s24, 1024  ;;  %p374_p4 = scmp.lt.s32.totalorder %s27_s24, %s27_s24 }
   0x9   :  { %p370_p3 = scmp.ne.s32.totalorder %s27_s24, %s369_s9  ;;  %p375_p5 = scmp.lt.s32.totalorder %s369_s9, %s369_s9 }
   0xb   :  { %p376_p6 = por %p375_p5, %p374_p4 }
   0xd   :  { %p377_p7 = pnand %p376_p6, %p370_p3 }
   0xf   :  { %380 = shalt.err (!%p377_p7)
}
  0x10   :  { %s408_s10 = smov 64   ;;  %s409_s11 = smov 4  }
  0x11   :  { %32 = dma.hbm_to_vmem [thread:$0]  %s502_s4, 1024, %s27_s24, [#allocation6], %s408_s10, %s408_s10, %s409_s11  }
  0x12   :  { %403 = dma.done.wait [#allocation6], 1024  }
  0x13   :  { %404 = vsyncadd [#allocation6], 4294966272  ;;  %v410_v0 = vmov 0.0   ;;  %vm411_vm0 = vmmov 0   ;;  %v341_v1 = vld [vmem:[%s500_s2] sm:$0xff]   ;;  %vm67_vm1 = vcmask 130048  }
  0x14   :  { %304 = vmatprep.subr.bf16.mxu0 %v410_v0  ;;  %306 = vmatprep.mubr.msk.bf16.mxu0 %vm411_vm0, %v410_v0  ;;  %v342_v2 = vld [vmem:[%s499_s1] sm:$0xff]   ;;  %v344_v11 = vld [vmem:[#allocation5 + $0x8] sm:$0xff]   ;;  %v345_v12 = vld [vmem:[#allocation5 + $0x10] sm:$0xff]   ;;  %v412_v28 = vmov 0   ;;  %s413_s21 = smov [#allocation8]  }
  0x15   :  { %310 = vmatprep.subr.bf16.mxu1 %v410_v0  ;;  %326 = vmatprep.mubr.msk.bf16.mxu1 %vm411_vm0, %v410_v0  ;;  %v280_v3 = vld [vmem:[%s501_s3] ss:$0 sm:$0xff]  ;;  %v346_v21 = vld [vmem:[#allocation5 + $0x18] sm:$0xff]   ;;  %v348_v23 = vld [vmem:[#allocation5 + $0x28] sm:$0xff]   ;;  %s268_s22 = sshll.u32 %s413_s21, 4  ;;  %s269_s22 = int_to_ptr.vmem [resolvable:$true] %s268_s22 }
  0x16   :  { %305 = vmatpush3.bf16.msra.mxu0 %v341_v1  ;;  %v343_v10 = vld [vmem:[#allocation5] sm:$0xff]   ;;  %v349_v24 = vld [vmem:[#allocation5 + $0x30] sm:$0xff]   ;;  %v350_v25 = vld [vmem:[#allocation5 + $0x38] sm:$0xff]   ;;  %339 = vset.pattern.permute.xlu0 %v412_v28  ;;  %s381_s0 = scalar_lea.vmem %s269_s22, 256  ;;  %p386_p9 = scmp.lt.s32.totalorder %s269_s22, %s269_s22 }
  0x17   :  { %311 = vmatpush3.bf16.msra.mxu1 %v343_v10  ;;  %v347_v22 = vld [vmem:[#allocation5 + $0x20] sm:$0xff]   ;;  %v239_v27 = vld [vmem:[%s503_s5 + $0x8] sm:$0xff]  ;;  %340 = vset.pattern.permute.xlu1 %v412_v28  ;;  %p382_p8 = scmp.ne.s32.totalorder %s269_s22, %s381_s0  ;;  %p387_p10 = scmp.lt.s32.totalorder %s381_s0, %s381_s0 }
  0x18   :  { %312 = vmatprep.subr.bf16.mxu1 %v410_v0  ;;  %v238_v26 = vld [vmem:[%s503_s5] sm:$0xff]  ;;  %vm241_vm3 = vcmp.gt.f32.partialorder %v239_v27, 0.5 }
  0x19   :  { %307 = vmatmul.mubr.msk.bf16.vlgmr.msra.gmra.mrb[0].mxu0 %vm67_vm1, %v342_v2  ;;  %vm240_vm2 = vcmp.gt.f32.partialorder %v238_v26, 0.5  ;;  %v244_v30 = vsel %vm241_vm3, 1, %v412_v28  ;;  %v292_v40 = vld [vmem:[%s504_s6] ss:$0 sm:$0xff]  ;;  %p388_p11 = por %p387_p10, %p386_p9 }
  0x1a   :  { %v243_v29 = vsel %vm240_vm2, 1, %v412_v28 }
  0x1b   :  { %313 = vmatpush3.bf16.msra.mxu1 %v344_v11  ;;  %p389_p12 = pnand %p388_p11, %p382_p8 }
  0x1c   :  { %314 = vmatprep.subr.bf16.mxu1 %v410_v0 }
  0x1f   :  { %315 = vmatpush3.bf16.msra.mxu1 %v345_v12 }
  0x20   :  { %316 = vmatprep.subr.bf16.mxu1 %v410_v0 }
  0x23   :  { %317 = vmatpush3.bf16.msra.mxu1 %v346_v21 }
  0x24   :  { %318 = vmatprep.subr.bf16.mxu1 %v410_v0 }
  0x27   :  { %319 = vmatpush3.bf16.msra.mxu1 %v347_v22 }
  0x28   :  { %320 = vmatprep.subr.bf16.mxu1 %v410_v0 }
  0x2b   :  { %321 = vmatpush3.bf16.msra.mxu1 %v348_v23 }
  0x2c   :  { %322 = vmatprep.subr.bf16.mxu1 %v410_v0 }
  0x2f   :  { %323 = vmatpush3.bf16.msra.mxu1 %v349_v24 }
  0x30   :  { %324 = vmatprep.subr.bf16.mxu1 %v410_v0 }
  0x33   :  { %325 = vmatpush3.bf16.msra.mxu1 %v350_v25 }
  0xec   :  { %v105_v4 = vpop.f32.mrb[0].mxu0 }
  0xed   :  { %v106_v5 = vadd.f32 %v280_v3, %v105_v4  ;;  %v308_v6 = vpop.f32.mrb[1].mxu0 }
  0xee   :  { %v108_v7 = vpop.f32.mrb[2].mxu0 }
  0xef   :  { %112 = vmax.xlane.f32.xlu0 %v106_v5  ;;  %v309_v8 = vpop.f32.mrb[3].mxu0  ;;  %v109_v9 = vadd.f32 %v280_v3, %v108_v7 }
  0xf3   :  { %114 = vmax.xlane.f32.xlu0 %v109_v9 }
 0x109   :  { %246 = vperm.xlu0 %339, %v243_v29  }
 0x17c   :  { %v113_v13 = vpop.xlane.xlu0 %112 }
 0x17d   :  { %v116_v14 = vsub.f32 %v106_v5, %v113_v13 }
 0x17f   :  { %v118_v15 = vmul.f32 1.442695, %v116_v14 }
 0x180   :  { %v115_v16 = vpop.xlane.xlu0 %114 }
 0x181   :  { %351 = vpow2.f32 %v118_v15  ;;  %v117_v17 = vsub.f32 %v109_v9, %v115_v16 }
 0x183   :  { %v120_v18 = vmul.f32 1.442695, %v117_v17 }
 0x185   :  { %353 = vpow2.f32 %v120_v18 }
 0x188   :  { %v247_v38 = vpop.permute.xlu0 %246 }
 0x189   :  { %vm251_vm4 = vcmp.eq.s32.totalorder %v247_v38, 1 }
 0x18b   :  { %v352_v19 = vpop.eup %351 }
 0x18c   :  { %122 = vadd.xlane.f32.xlu1 %v352_v19 }
 0x18f   :  { %v354_v20 = vpop.eup %353 }
 0x190   :  { %124 = vadd.xlane.f32.xlu1 %v354_v20 }
 0x1a1   :  { %249 = vperm.xlu1 %340, %v244_v30  }
 0x219   :  { %v123_v31 = vpop.xlane.xlu1 %122 }
 0x21a   :  { %355 = vrcp.f32 %v123_v31 }
 0x21d   :  { %v125_v32 = vpop.xlane.xlu1 %124 }
 0x21e   :  { %357 = vrcp.f32 %v125_v32 }
 0x221   :  { %v250_v39 = vpop.permute.xlu1 %249 }
 0x222   :  { %vm252_vm5 = vcmp.eq.s32.totalorder %v250_v39, 1 }
 0x224   :  { %v356_v33 = vpop.eup %355 }
 0x225   :  { %v128_v35 = vmul.f32 %v356_v33, %v352_v19 }
 0x228   :  { %v358_v34 = vpop.eup %357 }
 0x229   :  { %v129_v36 = vmul.f32 %v358_v34, %v354_v20 }
 0x22b   :  { %v130_v37 = vpack.c.bf16 %v129_v36, %v128_v35 }
 0x22d   :  { %327 = vmatmul.mubr.bf16.vlgmr.msra.gmra.mrb[0].mxu1 %v130_v37 }
 0x300   :  { %v231_v41 = vpop.f32.mrb[0].mxu1 }
 0x301   :  { %v259_v42 = vsel %vm251_vm4, %v292_v40, %v231_v41  ;;  %v328_v43 = vpop.f32.mrb[1].mxu1 }
 0x302   :  { %261 = vst [vmem:[#allocation8] sm:$0xff] %v259_v42  ;;  %v234_v44 = vpop.f32.mrb[2].mxu1 }
 0x303   :  { %v260_v45 = vsel %vm252_vm5, %v292_v40, %v234_v44  ;;  %v329_v46 = vpop.f32.mrb[3].mxu1 }
 0x304   :  { %262 = vst [vmem:[#allocation8 + $0x8] sm:$0xff] %v260_v45 }
 0x305   :  { %392 = shalt.err (!%p389_p12)
}
 0x306   :  { %s393_s24 = scalar_lea.hbm %s505_s7, 256 }
 0x307   :  { %p394_p13 = scmp.ne.s32.totalorder %s505_s7, %s393_s24  ;;  %p397_p0 = scmp.lt.u32.totalorder %s393_s24, %s505_s7 }
 0x309   :  { %p399_p1 = pnand %p397_p0, %p394_p13 }
 0x30b   :  { %402 = shalt.err (!%p399_p1)
}
 0x30c   :  { %s414_s29 = smov 128   ;;  %s415_s30 = smov 8  }
 0x30d   :  { %274 = dma.vmem_to_hbm [thread:$0]  %s269_s22, 256, %s505_s7, [#allocation7], %s414_s29, %s414_s29, %s415_s30  }
 0x30e   :  { %405 = dma.done.wait [#allocation7], 256  }
 0x30f   :  { %406 = vsyncadd [#allocation7], 4294967040 }
 0x310   :  { %278 = vsyncpa [#allocation6], 1 }
 0x311   :  { %279 = vsyncpa [#allocation7], 1 }

</bundles_post_ra>
